<compile_context>
chip_gen: v7x
topology: tpu7x:2x2x1
jax: 0.10.0
libtpu: 0.0.40
codegen_flags: <defaults>
</compile_context>

<pallas_src>
import functools

import jax
import jax.numpy as jnp
from jax import lax
from jax.experimental import pallas as pl
from jax.experimental.pallas import tpu as pltpu


def _mlp_global_kernel(ids_ref, node_ref, glob_ref, w1_ref, w2_ref, b_ref,
                       out_ref, acc_ref, *, n_node_feats, scatter_dtype):
    k = pl.program_id(0)

    @pl.when(k == 0)
    def _init():
        acc_ref[...] = jnp.zeros_like(acc_ref)

    B = glob_ref.shape[0]
    tc = node_ref.shape[0]

    # ---- scatter-(sum, count) of this node tile into per-graph slots ------------
    ids = ids_ref[...]                                         # (1, tc) int32
    graph_iota = lax.broadcasted_iota(jnp.int32, (B, tc), 0)   # (B, tc)
    onehot = (graph_iota == ids).astype(scatter_dtype)         # (B, tc), exact 0/1
    # node_ref carries [node_feats | 1]; column n_node_feats of the product is the
    # per-graph node count (count reduction fused into the MXU matmul).
    acc_ref[...] += jnp.dot(onehot, node_ref[...].astype(scatter_dtype),
                            preferred_element_type=jnp.float32)

    # ---- finalize: mean, "concat" with glob (two row-sliced GEMMs), MLP ----------
    @pl.when(k == pl.num_programs(0) - 1)
    def _finalize():
        acc = acc_ref[...]                                     # (B, N_c + 1)
        sums = acc[:, :n_node_feats]                           # (B, N_c)
        counts = acc[:, n_node_feats:]                         # (B, 1)
        inv = pl.reciprocal(jnp.maximum(counts, 1.0), approx=True)
        mean = sums * inv                                      # (B, N_c)

        w1 = w1_ref[...]                                       # (N_c + N_g, H)
        b = b_ref[...]                                         # (2, H) = [b1; b2]
        # concat([mean, glob]) @ W1  ==  mean @ W1[:N_c] + glob @ W1[N_c:]
        h = (jnp.dot(mean, w1[:n_node_feats, :], preferred_element_type=jnp.float32)
             + jnp.dot(glob_ref[...], w1[n_node_feats:, :],
                       preferred_element_type=jnp.float32)
             + b[0:1, :])
        h = jnp.maximum(h, 0.0)

        o = jnp.dot(h, w2_ref[...], preferred_element_type=jnp.float32) + b[1:2, :]
        out_ref[...] = jnp.maximum(o, 0.0).astype(out_ref.dtype)


def mlp_global_layer(node_feats, batch_ids, glob_feats, w1, b1, w2, b2,
                     *, tc=512, use_bf16_scatter=False):
    """node_feats (C, N_c) f32, batch_ids (C,) int, glob_feats (B, N_g) f32.

    w1 : (N_c + N_g, H), b1 : (H,), w2 : (H, H), b2 : (H,).  Returns (B, H) f32.
    """
    C, N_c = node_feats.shape
    B, N_g = glob_feats.shape
    H = w2.shape[1]
    assert w1.shape == (N_c + N_g, H)
    assert tc % 128 == 0, "node tile must be a multiple of 128 lanes"

    C_pad = pl.cdiv(C, tc) * tc

    # [node_feats | 1]: the ones column makes the scatter matmul produce counts too.
    node_aug = jnp.concatenate(
        [node_feats, jnp.ones((C, 1), node_feats.dtype)], axis=1)
    node_aug = jnp.pad(node_aug, ((0, C_pad - C), (0, 0)))
    # Padded rows get batch id -1 -> they match no graph (same as being absent).
    ids = jnp.pad(batch_ids.astype(jnp.int32), (0, C_pad - C),
                  constant_values=-1).reshape(1, C_pad)

    biases = jnp.concatenate([b1.reshape(1, H), b2.reshape(1, H)], axis=0)

    scatter_dtype = jnp.bfloat16 if use_bf16_scatter else jnp.float32
    kernel = functools.partial(_mlp_global_kernel,
                               n_node_feats=N_c, scatter_dtype=scatter_dtype)

    def resident(shape):
        return pl.BlockSpec(shape, lambda k: tuple(0 for _ in shape))

    return pl.pallas_call(
        kernel,
        out_shape=jax.ShapeDtypeStruct((B, H), jnp.float32),
        grid=(C_pad // tc,),
        in_specs=[
            pl.BlockSpec((1, tc), lambda k: (0, k)),         # batch-id tile
            pl.BlockSpec((tc, N_c + 1), lambda k: (k, 0)),   # [node | 1] tile
            resident((B, N_g)),                              # glob feats (resident)
            resident((N_c + N_g, H)),                        # W1 (resident)
            resident((H, H)),                                # W2 (resident)
            resident((2, H)),                                # [b1; b2] (resident)
        ],
        out_specs=resident((B, H)),
        scratch_shapes=[pltpu.VMEM((B, N_c + 1), jnp.float32)],
        compiler_params=pltpu.CompilerParams(
            dimension_semantics=("arbitrary",),   # C axis carries the accumulator
            vmem_limit_bytes=32 * 1024 * 1024,    # fits v5e/v6e (128 MiB) and v7x (64 MiB)
        ),
    )(ids, node_aug, glob_feats, w1, w2, biases)


if __name__ == "__main__":
    # Small, module-consistent shapes; C > tile so the accumulator loop is exercised.
    B = 2        # graphs in batch
    C = 300      # total nodes (padded to 384 = 3 tiles of 128 inside the wrapper)
    N_c = 4      # node features
    N_g = 3      # global features
    H = 32       # MLP width (feature_size / N_o); depth-2 ReLU MLP

    key = jax.random.PRNGKey(0)
    k_node, k_glob, k_w1, k_b1, k_w2, k_b2, k_batch = jax.random.split(key, 7)

    node_feats = jax.random.normal(k_node, (C, N_c), dtype=jnp.float32)
    glob_feats = jax.random.normal(k_glob, (B, N_g), dtype=jnp.float32)
    # Node -> graph assignment (every graph gets at least one node).
    batch_ids = jnp.sort(
        jnp.concatenate([jnp.arange(B, dtype=jnp.int32),
                         jax.random.randint(k_batch, (C - B,), 0, B, jnp.int32)]))

    # MLP parameters: Linear(N_c+N_g -> H), ReLU, Linear(H -> H), ReLU.
    w1 = jax.random.normal(k_w1, (N_c + N_g, H), dtype=jnp.float32) * 0.1
    b1 = jax.random.normal(k_b1, (H,), dtype=jnp.float32) * 0.1
    w2 = jax.random.normal(k_w2, (H, H), dtype=jnp.float32) * 0.1
    b2 = jax.random.normal(k_b2, (H,), dtype=jnp.float32) * 0.1

    out = mlp_global_layer(node_feats, batch_ids, glob_feats,
                           w1, b1, w2, b2, tc=128)
    out = jax.block_until_ready(out)

    # Pure-JAX reference (scatter-mean + concat + MLP).
    sums = jax.ops.segment_sum(node_feats, batch_ids, num_segments=B)
    cnts = jax.ops.segment_sum(jnp.ones((C, 1), jnp.float32), batch_ids,
                               num_segments=B)
    mean = sums / jnp.maximum(cnts, 1.0)
    x = jnp.concatenate([mean, glob_feats], axis=1)
    ref = jnp.maximum(x @ w1 + b1, 0.0)
    ref = jnp.maximum(ref @ w2 + b2, 0.0)

    assert out.shape == (B, H)
    assert jnp.allclose(out, ref, atol=5e-3, rtol=5e-3), (
        f"max abs err {jnp.max(jnp.abs(out - ref))}")

    # Opt-in bf16 MXU path for the scatter matmul (slightly looser numerics).
    out_bf16 = jax.block_until_ready(
        mlp_global_layer(node_feats, batch_ids, glob_feats, w1, b1, w2, b2,
                         tc=128, use_bf16_scatter=True))
    assert jnp.allclose(out_bf16, ref, atol=5e-2, rtol=5e-2)

    print("KERNEL_OK")
</pallas_src>

<mosaic_0001>
module attributes {stable_mosaic.version = 11 : i64} {
  func.func @_mlp_global_kernel(%arg0: i32, %arg1: memref<1x128xi32, #tpu.memory_space<vmem>>, %arg2: memref<128x5xf32, #tpu.memory_space<vmem>>, %arg3: memref<2x3xf32, #tpu.memory_space<vmem>>, %arg4: memref<7x32xf32, #tpu.memory_space<vmem>>, %arg5: memref<32x32xf32, #tpu.memory_space<vmem>>, %arg6: memref<2x32xf32, #tpu.memory_space<vmem>>, %arg7: memref<2x32xf32, #tpu.memory_space<vmem>>, %arg8: memref<2x5xf32, #tpu.memory_space<vmem>>) attributes {dimension_semantics = [#tpu.dimension_semantics<arbitrary>], iteration_bounds = array<i64: 3>, scalar_prefetch = 0 : i64, scratch_operands = 1 : i64, tpu.core_type = #tpu.core_type<tc>, window_params = [{transform_indices = @transform_0, window_bounds = array<i64: 1, 128>}, {transform_indices = @transform_1, window_bounds = array<i64: 128, 5>}, {pipeline_mode = #tpu.pipeline_mode<synchronous>, transform_indices = @transform_2, window_bounds = array<i64: 2, 3>}, {pipeline_mode = #tpu.pipeline_mode<synchronous>, transform_indices = @transform_3, window_bounds = array<i64: 7, 32>}, {pipeline_mode = #tpu.pipeline_mode<synchronous>, transform_indices = @transform_4, window_bounds = array<i64: 32, 32>}, {pipeline_mode = #tpu.pipeline_mode<synchronous>, transform_indices = @transform_5, window_bounds = array<i64: 2, 32>}, {pipeline_mode = #tpu.pipeline_mode<synchronous>, transform_indices = @transform_6, window_bounds = array<i64: 2, 32>}]} {
    %c0_i32 = arith.constant 0 : i32
    %0 = arith.cmpi eq, %arg0, %c0_i32 : i32
    %1 = arith.extui %0 : i1 to i32
    %c0_i32_0 = arith.constant 0 : i32
    %2 = arith.cmpi ne, %1, %c0_i32_0 : i32
    scf.if %2 {
      %cst_9 = arith.constant 0.000000e+00 : f32
      %17 = vector.broadcast %cst_9 : f32 to vector<2x5xf32>
      %c0_10 = arith.constant 0 : index
      %c0_11 = arith.constant 0 : index
      %18 = vector.load %arg8[%c0_10, %c0_11] : memref<2x5xf32, #tpu.memory_space<vmem>>, vector<2x5xf32>
      tpu.vector_store %arg8[%c0_10, %c0_11], %17 {strides = array<i32>} : memref<2x5xf32, #tpu.memory_space<vmem>>, vector<2x5xf32>,
    } else {
    }
    %c0 = arith.constant 0 : index
    %c0_1 = arith.constant 0 : index
    %3 = vector.load %arg1[%c0, %c0_1] : memref<1x128xi32, #tpu.memory_space<vmem>>, vector<1x128xi32>
    %4 = tpu.iota {dimensions = array<i32: 0>} : vector<2x128xi32>
    %5 = vector.broadcast %3 : vector<1x128xi32> to vector<2x128xi32>
    %6 = arith.cmpi eq, %4, %5 : vector<2x128xi32>
    %7 = arith.extui %6 : vector<2x128xi1> to vector<2x128xi32>
    %8 = arith.sitofp %7 : vector<2x128xi32> to vector<2x128xf32>
    %c0_2 = arith.constant 0 : index
    %c0_3 = arith.constant 0 : index
    %9 = vector.load %arg8[%c0_2, %c0_3] : memref<2x5xf32, #tpu.memory_space<vmem>>, vector<2x5xf32>
    %c0_4 = arith.constant 0 : index
    %c0_5 = arith.constant 0 : index
    %10 = vector.load %arg2[%c0_4, %c0_5] : memref<128x5xf32, #tpu.memory_space<vmem>>, vector<128x5xf32>
    %cst = arith.constant dense<0.000000e+00> : vector<2x5xf32>
    %11 = tpu.matmul %8, %10, %cst {dimension_numbers = #tpu.dot_dimension_numbers<[1], [0], [0], [1], [0, 0, 1, 1], [], []>} : vector<2x128xf32>, vector<128x5xf32>, vector<2x5xf32> -> vector<2x5xf32>
    %12 = arith.addf %9, %11 : vector<2x5xf32>
    %c0_6 = arith.constant 0 : index
    %c0_7 = arith.constant 0 : index
    %13 = vector.load %arg8[%c0_6, %c0_7] : memref<2x5xf32, #tpu.memory_space<vmem>>, vector<2x5xf32>
    tpu.vector_store %arg8[%c0_6, %c0_7], %12 {strides = array<i32>} : memref<2x5xf32, #tpu.memory_space<vmem>>, vector<2x5xf32>,
    %c2_i32 = arith.constant 2 : i32
    %14 = arith.cmpi eq, %arg0, %c2_i32 : i32
    %15 = arith.extui %14 : i1 to i32
    %c0_i32_8 = arith.constant 0 : i32
    %16 = arith.cmpi ne, %15, %c0_i32_8 : i32
    scf.if %16 {
      %c0_9 = arith.constant 0 : index
      %c0_10 = arith.constant 0 : index
      %17 = vector.load %arg8[%c0_9, %c0_10] : memref<2x5xf32, #tpu.memory_space<vmem>>, vector<2x5xf32>
      %18 = vector.extract_strided_slice %17 {offsets = [0, 0], sizes = [2, 4], strides = [1, 1]} : vector<2x5xf32> to vector<2x4xf32>
      %19 = vector.extract_strided_slice %17 {offsets = [0, 4], sizes = [2, 1], strides = [1, 1]} : vector<2x5xf32> to vector<2x1xf32>
      %cst_11 = arith.constant 1.000000e+00 : f32
      %20 = vector.broadcast %cst_11 : f32 to vector<2x1xf32>
      %21 = arith.maximumf %19, %20 : vector<2x1xf32>
      %22 = tpu.reciprocal %21 {approx = true} : vector<2x1xf32> -> vector<2x1xf32>
      %23 = vector.broadcast %22 : vector<2x1xf32> to vector<2x4xf32>
      %24 = arith.mulf %18, %23 : vector<2x4xf32>
      %c0_12 = arith.constant 0 : index
      %c0_13 = arith.constant 0 : index
      %25 = vector.load %arg4[%c0_12, %c0_13] : memref<7x32xf32, #tpu.memory_space<vmem>>, vector<7x32xf32>
      %c0_14 = arith.constant 0 : index
      %c0_15 = arith.constant 0 : index
      %26 = vector.load %arg6[%c0_14, %c0_15] : memref<2x32xf32, #tpu.memory_space<vmem>>, vector<2x32xf32>
      %27 = vector.extract_strided_slice %25 {offsets = [0, 0], sizes = [4, 32], strides = [1, 1]} : vector<7x32xf32> to vector<4x32xf32>
      %cst_16 = arith.constant dense<0.000000e+00> : vector<2x32xf32>
      %28 = tpu.matmul %24, %27, %cst_16 {dimension_numbers = #tpu.dot_dimension_numbers<[1], [0], [0], [1], [0, 0, 1, 1], [], []>} : vector<2x4xf32>, vector<4x32xf32>, vector<2x32xf32> -> vector<2x32xf32>
      %c0_17 = arith.constant 0 : index
      %c0_18 = arith.constant 0 : index
      %29 = vector.load %arg3[%c0_17, %c0_18] : memref<2x3xf32, #tpu.memory_space<vmem>>, vector<2x3xf32>
      %30 = vector.extract_strided_slice %25 {offsets = [4, 0], sizes = [3, 32], strides = [1, 1]} : vector<7x32xf32> to vector<3x32xf32>
      %cst_19 = arith.constant dense<0.000000e+00> : vector<2x32xf32>
      %31 = tpu.matmul %29, %30, %cst_19 {dimension_numbers = #tpu.dot_dimension_numbers<[1], [0], [0], [1], [0, 0, 1, 1], [], []>} : vector<2x3xf32>, vector<3x32xf32>, vector<2x32xf32> -> vector<2x32xf32>
      %32 = arith.addf %28, %31 : vector<2x32xf32>
      %33 = vector.extract_strided_slice %26 {offsets = [0, 0], sizes = [1, 32], strides = [1, 1]} : vector<2x32xf32> to vector<1x32xf32>
      %34 = vector.broadcast %33 : vector<1x32xf32> to vector<2x32xf32>
      %35 = arith.addf %32, %34 : vector<2x32xf32>
      %cst_20 = arith.constant 0.000000e+00 : f32
      %36 = vector.broadcast %cst_20 : f32 to vector<2x32xf32>
      %37 = arith.maximumf %35, %36 : vector<2x32xf32>
      %c0_21 = arith.constant 0 : index
      %c0_22 = arith.constant 0 : index
      %38 = vector.load %arg5[%c0_21, %c0_22] : memref<32x32xf32, #tpu.memory_space<vmem>>, vector<32x32xf32>
      %cst_23 = arith.constant dense<0.000000e+00> : vector<2x32xf32>
      %39 = tpu.matmul %37, %38, %cst_23 {dimension_numbers = #tpu.dot_dimension_numbers<[1], [0], [0], [1], [0, 0, 1, 1], [], []>} : vector<2x32xf32>, vector<32x32xf32>, vector<2x32xf32> -> vector<2x32xf32>
      %40 = vector.extract_strided_slice %26 {offsets = [1, 0], sizes = [1, 32], strides = [1, 1]} : vector<2x32xf32> to vector<1x32xf32>
      %41 = vector.broadcast %40 : vector<1x32xf32> to vector<2x32xf32>
      %42 = arith.addf %39, %41 : vector<2x32xf32>
      %cst_24 = arith.constant 0.000000e+00 : f32
      %43 = vector.broadcast %cst_24 : f32 to vector<2x32xf32>
      %44 = arith.maximumf %42, %43 : vector<2x32xf32>
      %c0_25 = arith.constant 0 : index
      %c0_26 = arith.constant 0 : index
      %45 = vector.load %arg7[%c0_25, %c0_26] : memref<2x32xf32, #tpu.memory_space<vmem>>, vector<2x32xf32>
      tpu.vector_store %arg7[%c0_25, %c0_26], %44 {strides = array<i32>} : memref<2x32xf32, #tpu.memory_space<vmem>>, vector<2x32xf32>,
    } else {
    }
    return
  }
  func.func @transform_0(%arg0: i32) -> (i32, i32) {
    %c0_i32 = arith.constant 0 : i32
    %c0_i32_0 = arith.constant 0 : i32
    return %c0_i32, %arg0 : i32, i32
  }
  func.func @transform_1(%arg0: i32) -> (i32, i32) {
    %c0_i32 = arith.constant 0 : i32
    %c0_i32_0 = arith.constant 0 : i32
    return %arg0, %c0_i32 : i32, i32
  }
  func.func @transform_2(%arg0: i32) -> (i32, i32) {
    %c0_i32 = arith.constant 0 : i32
    %c0_i32_0 = arith.constant 0 : i32
    %c0_i32_1 = arith.constant 0 : i32
    return %c0_i32, %c0_i32_0 : i32, i32
  }
  func.func @transform_3(%arg0: i32) -> (i32, i32) {
    %c0_i32 = arith.constant 0 : i32
    %c0_i32_0 = arith.constant 0 : i32
    %c0_i32_1 = arith.constant 0 : i32
    return %c0_i32, %c0_i32_0 : i32, i32
  }
  func.func @transform_4(%arg0: i32) -> (i32, i32) {
    %c0_i32 = arith.constant 0 : i32
    %c0_i32_0 = arith.constant 0 : i32
    %c0_i32_1 = arith.constant 0 : i32
    return %c0_i32, %c0_i32_0 : i32, i32
  }
  func.func @transform_5(%arg0: i32) -> (i32, i32) {
    %c0_i32 = arith.constant 0 : i32
    %c0_i32_0 = arith.constant 0 : i32
    %c0_i32_1 = arith.constant 0 : i32
    return %c0_i32, %c0_i32_0 : i32, i32
  }
  func.func @transform_6(%arg0: i32) -> (i32, i32) {
    %c0_i32 = arith.constant 0 : i32
    %c0_i32_0 = arith.constant 0 : i32
    %c0_i32_1 = arith.constant 0 : i32
    return %c0_i32, %c0_i32_0 : i32, i32
  }
}

</mosaic_0001>

<bundles_post_ra>
// kernel: tpu_custom_call.1
= control target key start
LH: loop header
LB: loop body
LE: loop exit
PB: predicated region body
PF: predicated region fallthrough
CT: control target
= control target key end

     0   :  { %11 = vsyncpa [#allocation4], 0  ;;  %s920_s21 = smov 0   ;;  %s1019_s0 = inlined_call_operand.vmem [shape: s32[1,384], index: 0, kind: input, shape index: {}]   ;;  %s1020_s1 = inlined_call_operand.vmem [shape: f32[384,5], index: 1, kind: input, shape index: {}]   ;;  %s1021_s2 = inlined_call_operand.vmem [shape: f32[2,3], index: 2, kind: input, shape index: {}]   ;;  %s1022_s3 = inlined_call_operand.vmem [shape: f32[7,32], index: 3, kind: input, shape index: {}]   ;;  %s1023_s4 = inlined_call_operand.vmem [shape: f32[32,32], index: 4, kind: input, shape index: {}]   ;;  %s1024_s5 = inlined_call_operand.vmem [shape: f32[2,32], index: 5, kind: input, shape index: {}]   ;;  %s1025_s6 = inlined_call_operand.hbm [shape: f32[2,32], index: 6, kind: output, shape index: {}]  }
   0x1 LB: > { %s926_s22 = sadd.s32 4294967295, %s873_s21   ;;  %p681_p0 = scmp.ge.s32.totalorder %s873_s21, 1  ;;  %s873_s21 = sphi %s920_s21, %s17_s21  }
   0x2   : > { %p217_p1 = scmp.lt.s32.totalorder %s873_s21, 4 }
   0x4   : > { %p218_p2 = pnand %p681_p0, %p217_p1 }
   0x5   : > { %p245_p3 = scmp.lt.s32.totalorder (!%p218_p2), %s926_s22, 2  ;;  %s682_s23 = sshll.u32 (!%p218_p2), %s926_s22, 4 }
   0x6   : > { %221 = sbr.rel (%p218_p2) target bundleno = 880 (0x370), region = 44  ;;  %p249_p4 = scmp.lt.s32.totalorder (!%p218_p2), %s682_s23, 47 }
   0x7   : > { %p684_p5 = scmp.ne.s32.totalorder (!%p218_p2), %s926_s22, 0 }
   0xd   : > { %s933_s24 = scalar_select %p245_p3, %s926_s22, 2 }
   0xe   : > { %s1027_s23 = smov (!%p249_p4, %s682_s23), 47  ;;  %257 = sbr.rel (%p684_p5) target bundleno = 21 (0x15), region = 48 }
   0xf   : > { %s247_s27 = scalar_lea.vmem %s1019_s0, %s933_s24  ;;  %s683_s28 = sshll.u32 %s1027_s23, 3  ;;  %vm258_vm0 = vcmask (!%p684_p5), 33792   ;;  %v875_v0 = vmov (!%p684_p5), 0.0  }
  0x10   : > { %s942_s7 = scalar_lea.vmem %s1020_s1, %s683_s28  ;;  %259 = vst.msk [vmem:[#allocation2] sm:$0x3] (!%p684_p5), %vm258_vm0, %v875_v0 }
  0x15 PF: > { %v271_v1 = vld [vmem:[%s942_s7] sm:$0xff]  ;;  %v272_v2 = vld [vmem:[%s942_s7 + $0x8] sm:$0xff]  ;;  %v273_v3 = vld [vmem:[%s942_s7 + $0x10] sm:$0xff]  ;;  %v876_v4 = vmov 0.0|0.0   ;;  %vm877_vm1 = vmmov 0   ;;  %v878_v7 = vmov 0.0   ;;  %v261_v24 = vlaneseq }
  0x16   : > { %780 = vmatprep.subr.bf16.mxu0 %v876_v4  ;;  %v781_v5 = vpack.c.bf16 %v272_v2, %v271_v1  ;;  %v274_v6 = vld [vmem:[%s942_s7 + $0x18] sm:$0xff]  ;;  %756 = vmatprep.mubr.msk.f32.mxu0 %vm877_vm1, %v878_v7  ;;  %v275_v9 = vld [vmem:[%s942_s7 + $0x20] sm:$0xff]  ;;  %v276_v10 = vld [vmem:[%s942_s7 + $0x28] sm:$0xff]  ;;  %v879_v30 = vmov 1.0   ;;  %vm358_vm3 = vcmask 33792   ;;  %p688_p6 = scmp.ne.s32.totalorder %s926_s22, 2 }
  0x17   : > { %v784_v8 = vpack.c.bf16 %v274_v6, %v273_v3  ;;  %v787_v11 = vpack.c.bf16 %v276_v10, %v275_v9  ;;  %v277_v12 = vld [vmem:[%s942_s7 + $0x30] sm:$0xff]  ;;  %v278_v13 = vld [vmem:[%s942_s7 + $0x38] sm:$0xff]  ;;  %v279_v15 = vld [vmem:[%s942_s7 + $0x40] sm:$0xff]  ;;  %v961_v28 = vshrl.u32 %v261_v24, 7  ;;  %v880_v37 = vmov (!%p688_p6), 4  }
  0x18   : > { %782 = vmatpush3.bf16.msra.mxu0 %v781_v5  ;;  %v790_v14 = vpack.c.bf16 %v278_v13, %v277_v12  ;;  %v280_v16 = vld [vmem:[%s942_s7 + $0x48] sm:$0xff]  ;;  %v281_v18 = vld [vmem:[%s942_s7 + $0x50] sm:$0xff]  ;;  %v282_v19 = vld [vmem:[%s942_s7 + $0x58] sm:$0xff]  ;;  %834 = vset.pattern.permute.xlu0 (!%p688_p6), %v880_v37  ;;  %v881_v39 = vmov (!%p688_p6), 0.0   ;;  %vm382_vm4 = vcmask (!%p688_p6), 1042432   ;;  %vm882_vm5 = vmmov (!%p688_p6), 0  }
  0x19   : > { %783 = vmatprep.subr.bf16.mxu0 %v876_v4  ;;  %v793_v17 = vpack.c.bf16 %v280_v16, %v279_v15  ;;  %v796_v20 = vpack.c.bf16 %v282_v19, %v281_v18  ;;  %v283_v21 = vld [vmem:[%s942_s7 + $0x60] sm:$0xff]  ;;  %v284_v22 = vld [vmem:[%s942_s7 + $0x68] sm:$0xff]  ;;  %v285_v25 = vld [vmem:[%s942_s7 + $0x70] sm:$0xff]  ;;  %759 = vmatprep.subr.mxu1 (!%p688_p6), %v881_v39  ;;  %vm378_vm6 = vcmask (!%p688_p6), 23552   ;;  %vm459_vm7 = vcmask (!%p688_p6), 1043456  }
  0x1a   : > { %v799_v23 = vpack.c.bf16 %v284_v22, %v283_v21  ;;  %v286_v26 = vld [vmem:[%s942_s7 + $0x78] sm:$0xff]  ;;  %v685_v29 = vld [vmem:[%s247_s27] ss:$0 sm:$0xff]  ;;  %761 = vmatprep.mubr.msk.f32.mxu1 (!%p688_p6), %vm882_vm5, %v881_v39  ;;  %v883_v43 = vmov (!%p688_p6), 0.0|0.0   ;;  %vm455_vm8 = vcmask (!%p688_p6), 31744   ;;  %v539_v49 = vld [vmem:[%s1023_s4 + $0x8] sm:$0xff] (!%p688_p6) }
  0x1b   : > { %v802_v27 = vpack.c.bf16 %v286_v26, %v285_v25  ;;  %vm267_vm2 = vcmp.eq.s32.totalorder %v961_v28, %v685_v29  ;;  %v270_v31 = vld [vmem:[#allocation2] sm:$0x3]  ;;  %v540_v51 = vld [vmem:[%s1023_s4 + $0x10] sm:$0xff] (!%p688_p6)  ;;  %v541_v52 = vld [vmem:[%s1023_s4 + $0x18] sm:$0xff] (!%p688_p6)  ;;  %v534_v54 = vsub.s32 (!%p688_p6), 0, %v961_v28  ;;  %vm546_vm9 = vcmask (!%p688_p6), 261120  }
  0x1c   : > { %785 = vmatpush3.bf16.msra.mxu0 %v784_v8  ;;  %v373_v36 = vld [vmem:[%s1022_s3] sm:$0x7f] (!%p688_p6)  ;;  %v808_v53 = vpack.c.bf16 (!%p688_p6), %v541_v52, %v540_v51  ;;  %v544_v62 = vsub.s32 (!%p688_p6), 1, %v961_v28  ;;  %vm621_vm10 = vcmask (!%p688_p6), 254976  }
  0x1d   : > { %786 = vmatprep.subr.bf16.mxu0 %v876_v4  ;;  %v377_v40 = vrot.slane (!%p688_p6), %v373_v36, 4  ;;  %v375_v41 = vld [vmem:[%s1021_s2] sm:$0x3] (!%p688_p6) }
  0x1e   : > { %v538_v48 = vld [vmem:[%s1023_s4] sm:$0xff] (!%p688_p6) }
  0x1f   : > { %760 = vmatpush3.msk.msra.mxu1 (!%p688_p6), %vm382_vm4, %v377_v40  ;;  %v805_v50 = vpack.c.bf16 (!%p688_p6), %v539_v49, %v538_v48  ;;  %v374_v55 = vld [vmem:[%s1024_s5] sm:$0x3] (!%p688_p6) }
  0x20   : > { %788 = vmatpush3.bf16.msra.mxu0 %v787_v11  ;;  %762 = vmatmul.mubr.msk.f32.vlgmr.msra.gmra.mrb[0].mxu1 (!%p688_p6), %vm378_vm6, %v375_v41  ;;  %v535_v56 = vrot.slane (!%p688_p6), %v374_v55, %v534_v54  ;;  %v545_v63 = vrot.slane (!%p688_p6), %v374_v55, %v544_v62 }
  0x21   : > { %789 = vmatprep.subr.bf16.mxu0 %v876_v4  ;;  %764 = vmatprep.subr.mxu1 (!%p688_p6), %v881_v39 }
  0x22   : > { %765 = vmatpush3.msk.msra.mxu1 (!%p688_p6), %vm459_vm7, %v373_v36  ;;  %766 = vmatprep.mubr.msk.f32.mxu1 (!%p688_p6), %vm882_vm5, %v881_v39 }
  0x24   : > { %791 = vmatpush3.bf16.msra.mxu0 %v790_v14 }
  0x25   : > { %792 = vmatprep.subr.bf16.mxu0 %v876_v4 }
  0x28   : > { %794 = vmatpush3.bf16.msra.mxu0 %v793_v17 }
  0x29   : > { %795 = vmatprep.subr.bf16.mxu0 %v876_v4 }
  0x2c   : > { %797 = vmatpush3.bf16.msra.mxu0 %v796_v20 }
  0x2d   : > { %798 = vmatprep.subr.bf16.mxu0 %v876_v4 }
  0x30   : > { %800 = vmatpush3.bf16.msra.mxu0 %v799_v23 }
  0x31   : > { %801 = vmatprep.subr.bf16.mxu0 %v876_v4 }
  0x34   : > { %803 = vmatpush3.bf16.msra.mxu0 %v802_v27 }
  0x35   : > { %804 = vmatprep.subr.bf16.mxu0 (!%p688_p6), %v883_v43 }
  0x37   : > { %757 = vmatmul.mubr.msk.f32.vlgmr.msra.gmra.mrb[0].mxu0 %vm267_vm2, %v879_v30 }
  0x38   : > { %777 = vmatprep.mubr.msk.f32.mxu0 (!%p688_p6), %vm882_vm5, %v881_v39  ;;  %806 = vmatpush3.bf16.msra.mxu0 (!%p688_p6), %v805_v50 }
  0x39   : > { %807 = vmatprep.subr.bf16.mxu0 (!%p688_p6), %v883_v43 }
  0x3c   : > { %809 = vmatpush3.bf16.msra.mxu0 (!%p688_p6), %v808_v53 }
  0xf3   : > { %v451_v46 = vpop.f32.mrb[0].mxu1 (!%p688_p6) }
  0xf4   : > { %v763_v47 = vpop.f32.mrb[1].mxu1 (!%p688_p6) }
 0x107   : > { %363 = sbr.rel (%p688_p6) target bundleno = 855 (0x357), region = 52 }
 0x10a   : > { %v353_v32 = vpop.f32.mrb[0].mxu0 }
 0x10b   : > { %v357_v33 = vadd.f32 %v353_v32, %v270_v31  ;;  %v758_v34 = vpop.f32.mrb[1].mxu0 }
 0x10d   : > { %359 = vst.msk [vmem:[#allocation2] sm:$0x3] %vm358_vm3, %v357_v33 }
 0x114   : > { %v364_v35 = vld [vmem:[#allocation2] sm:$0x3] }
 0x115   : > { %v365_v38 = vmax.f32 %v364_v35, 1.0 }
 0x117   : > { %835 = vrcp.f32 %v365_v38 }
 0x121   : > { %v836_v42 = vpop.eup %835 }
 0x122   : > { %369 = vperm.xlu0 %834, %v836_v42  }
 0x1a1   : > { %v370_v44 = vpop.permute.xlu0 %369 }
 0x1a2   : > { %v372_v45 = vmul.f32 %v370_v44, %v364_v35 }
 0x1a4   : > { %767 = vmatmul.mubr.msk.f32.vlgmr.msra.gmra.mrb[2].mxu1 %vm455_vm8, %v372_v45 }
 0x277   : > { %v528_v57 = vpop.f32.mrb[2].mxu1 }
 0x278   : > { %v529_v58 = vadd.f32 %v528_v57, %v451_v46  ;;  %v768_v59 = vpop.f32.mrb[3].mxu1 }
 0x27a   : > { %v536_v60 = vadd.f32 %v535_v56, %v529_v58 }
 0x27c   : > { %v537_v61 = vmax.f32 %v536_v60, 0.0 }
 0x27e   : > { %778 = vmatmul.mubr.msk.f32.vlgmr.msra.gmra.mrb[0].mxu0 %vm546_vm9, %v537_v61 }
 0x351   : > { %v616_v0 = vpop.f32.mrb[0].mxu0 }
 0x352   : > { %v617_v1 = vadd.f32 %v616_v0, %v545_v63  ;;  %v779_v2 = vpop.f32.mrb[1].mxu0 }
 0x354   : > { %v620_v3 = vmax.f32 %v617_v1, 0.0 }
 0x356   : > { %622 = vst.msk [vmem:[#allocation3] sm:$0x3] %vm621_vm10, %v620_v3 }
 0x357 PF: > { %p814_p7 = scmp.eq.s32.totalorder %s926_s22, 2  ;;  %s884_s26 = smov [#allocation3]  }
 0x358   : > { %s630_s27 = sshll.u32 %s884_s26, 4  ;;  %s631_s27 = int_to_ptr.vmem [resolvable:$true] %s630_s27 }
 0x359   : > { %s837_s28 = scalar_lea.vmem %s631_s27, 32  ;;  %p844_p11 = scmp.lt.s32.totalorder %s631_s27, %s631_s27 }
 0x35a   : > { %p838_p8 = scmp.ne.s32.totalorder %s631_s27, %s837_s28  ;;  %p845_p12 = scmp.lt.s32.totalorder %s837_s28, %s837_s28 }
 0x35c   : > { %p839_p9 = pnand %p838_p8, %p814_p7  ;;  %p846_p13 = por %p845_p12, %p844_p11 }
 0x35e   : > { %p840_p10 = pneg %p839_p9 }
 0x360   : > { %p847_p0 = pnand %p846_p13, %p840_p10 }
 0x362   : > { %850 = shalt.err (!%p847_p0)
}
 0x363   : > { %s851_s7 = scalar_lea.hbm %s1025_s6, 32 }
 0x364   : > { %p852_p1 = scmp.ne.s32.totalorder %s1025_s6, %s851_s7  ;;  %p857_p4 = scmp.lt.u32.totalorder %s851_s7, %s1025_s6 }
 0x366   : > { %p853_p2 = pnand %p852_p1, %p814_p7 }
 0x368   : > { %p854_p3 = pneg %p853_p2 }
 0x36a   : > { %p859_p5 = pnand %p857_p4, %p854_p3 }
 0x36c   : > { %862 = shalt.err (!%p859_p5)
}
 0x36d   : > { %811 = dma.vmem_to_hbm [thread:$0]  (%p814_p7), %s631_s27, 32, %s1025_s6, [#allocation4]  }
 0x36e   : > { %868 = dma.done.wait (%p814_p7), [#allocation4], 32  }
 0x36f   : > { %870 = vsyncadd (%p814_p7), [#allocation4], 4294967264 }
 0x370 PF: > { %s17_s21 = sadd.s32 1, %s873_s21  }
 0x371   : > { %p14_p6 = scmp.ge.s32.totalorder %s17_s21, 5  }
 0x373   :  { %16 = sbr.rel (!%p14_p6) target bundleno = 1 (0x1), region = 82 }
 0x37a   :  { %643 = vsyncpa [#allocation4], 1 }
 0x37b   :  { %645 = vsyncpa [#allocation4 + $0x1], 1 }

</bundles_post_ra>
